<compile_context>
chip_gen: v5e
topology: v5e:2x2
jax: 0.10.0
libtpu: 0.0.40
codegen_flags: <defaults>
</compile_context>

<pallas_src>
import math
import functools

import jax
import jax.numpy as jnp
from jax.experimental import pallas as pl
from jax.experimental.pallas import tpu as pltpu


# ---------------------------------------------------------------------------
# Buffer construction — deterministic, same math as the PyTorch module.
# ---------------------------------------------------------------------------
def make_positional_encoding(max_len: int, d_model: int) -> jnp.ndarray:
    position = jnp.arange(0, max_len, dtype=jnp.float32)[:, None]            # (L, 1)
    div_term = jnp.exp(
        jnp.arange(0, d_model, 2, dtype=jnp.float32)
        * (-math.log(10000.0) / d_model)
    )                                                                          # (D/2,)
    angles = position * div_term                                               # (L, D/2)
    pe = jnp.zeros((max_len, d_model), dtype=jnp.float32)
    pe = pe.at[:, 0::2].set(jnp.sin(angles))
    pe = pe.at[:, 1::2].set(jnp.cos(angles))
    return pe                                                                  # (L, D)


# ---------------------------------------------------------------------------
# Pallas kernels (same bodies serve both the single-block and tiled paths;
# pe broadcasts over the leading batch dim via standard numpy broadcasting).
# ---------------------------------------------------------------------------
def _pe_add_kernel(x_ref, pe_ref, o_ref):
    # eval mode: dropout is identity -> just the broadcast add.
    o_ref[...] = x_ref[...] + pe_ref[...]


def _pe_add_dropout_kernel(x_ref, pe_ref, u_ref, o_ref, *, p: float):
    # training mode: inverted dropout.  u ~ U[0,1) precomputed; keep iff u >= p.
    scale = jnp.float32(1.0 / (1.0 - p))
    y = (x_ref[...] + pe_ref[...]) * scale
    keep = u_ref[...] >= jnp.float32(p)
    o_ref[...] = jnp.where(keep, y, jnp.zeros_like(y))


# ---------------------------------------------------------------------------
# Wrapper
# ---------------------------------------------------------------------------
_SINGLE_BLOCK_MAX_BYTES = 2 * 1024 * 1024       # whole-array fast path threshold
_TARGET_BLOCK_BYTES = 2 * 1024 * 1024           # per-block target for tiled path
_VMEM_LIMIT_BYTES = 48 * 1024 * 1024            # safe on v5e/v6e (128 MiB) & v7x (64 MiB)


def _choose_seq_tile(S: int, D: int, itemsize: int,
                     target_bytes: int = _TARGET_BLOCK_BYTES) -> int:
    rows = target_bytes // max(1, D * itemsize)
    rows = max(8, (rows // 8) * 8)              # keep sublane (8) alignment
    return int(min(S, rows))


def positional_encoding_forward(x, pe, *, p: float = 0.1, training: bool = False,
                                rng_key=None, seq_block: int | None = None,
                                single_block_max_bytes: int = _SINGLE_BLOCK_MAX_BYTES):
    """x: (B, S, D) float32;  pe: (max_len, D) float32."""
    B, S, D = x.shape
    pe_slice = pe[:S, :]                         # (S, D) — glue slicing

    use_dropout = training and p > 0.0
    if use_dropout and p >= 1.0:                 # degenerate edge case (matches torch)
        return jnp.zeros_like(x)
    if use_dropout:
        if rng_key is None:
            rng_key = jax.random.PRNGKey(0)
        u = jax.random.uniform(rng_key, (B, S, D), dtype=jnp.float32)

    total_bytes = x.size * x.dtype.itemsize

    # ---------------- small path: one invocation, whole arrays, no grid ----
    if total_bytes <= single_block_max_bytes:
        if not use_dropout:
            return pl.pallas_call(
                _pe_add_kernel,
                out_shape=jax.ShapeDtypeStruct((B, S, D), x.dtype),
            )(x, pe_slice)
        return pl.pallas_call(
            functools.partial(_pe_add_dropout_kernel, p=float(p)),
            out_shape=jax.ShapeDtypeStruct((B, S, D), x.dtype),
        )(x, pe_slice, u)

    # ---------------- tiled path: grid = (S-tiles, B) -----------------------
    TS = seq_block if seq_block is not None else _choose_seq_tile(S, D, x.dtype.itemsize)
    TS = int(min(TS, S))
    NS = pl.cdiv(S, TS)
    grid = (NS, B)                               # S-tiles outer => pe tile reused over B

    x_spec = pl.BlockSpec((1, TS, D), lambda s, b: (b, s, 0))
    pe_spec = pl.BlockSpec((TS, D), lambda s, b: (s, 0))
    out_spec = pl.BlockSpec((1, TS, D), lambda s, b: (b, s, 0))

    cparams = pltpu.CompilerParams(
        dimension_semantics=("parallel", "parallel"),
        vmem_limit_bytes=_VMEM_LIMIT_BYTES,
    )

    if not use_dropout:
        return pl.pallas_call(
            _pe_add_kernel,
            out_shape=jax.ShapeDtypeStruct((B, S, D), x.dtype),
            grid=grid,
            in_specs=[x_spec, pe_spec],
            out_specs=out_spec,
            compiler_params=cparams,
        )(x, pe_slice)

    return pl.pallas_call(
        functools.partial(_pe_add_dropout_kernel, p=float(p)),
        out_shape=jax.ShapeDtypeStruct((B, S, D), x.dtype),
        grid=grid,
        in_specs=[x_spec, pe_spec, x_spec],      # u has same shape/tiling as x
        out_specs=out_spec,
        compiler_params=cparams,
    )(x, pe_slice, u)


# ---------------------------------------------------------------------------
# Main
# ---------------------------------------------------------------------------
if __name__ == "__main__":
    B, S, D = 2, 8, 32
    MAX_LEN = 64
    P = 0.1

    key = jax.random.PRNGKey(0)
    kx, kdrop = jax.random.split(key)
    x = jax.random.normal(kx, (B, S, D), dtype=jnp.float32)
    pe = make_positional_encoding(MAX_LEN, D)
    ref_eval = x + pe[None, :S, :]

    # 1) eval-mode forward (dropout = identity), single-block fast path
    out = jax.block_until_ready(positional_encoding_forward(x, pe, p=P, training=False))
    assert jnp.allclose(out, ref_eval, atol=1e-6), "eval mismatch vs reference"

    # 2) training-mode forward (dropout active) — deterministic check: the
    #    mask uniforms come from kdrop, so the reference is exact.
    out_tr = jax.block_until_ready(
        positional_encoding_forward(x, pe, p=P, training=True, rng_key=kdrop))
    u = jax.random.uniform(kdrop, (B, S, D), dtype=jnp.float32)
    ref_tr = jnp.where(u >= P, ref_eval / (1.0 - P), 0.0)
    assert jnp.allclose(out_tr, ref_tr, atol=1e-5), "dropout mismatch vs reference"

    # 3) exercise the tiled (grid) path on a modest shape, both modes
    B2, S2, D2 = 2, 64, 128
    x2 = jax.random.normal(jax.random.PRNGKey(1), (B2, S2, D2), dtype=jnp.float32)
    pe2 = make_positional_encoding(128, D2)
    ref2 = x2 + pe2[None, :S2, :]

    out2 = jax.block_until_ready(positional_encoding_forward(
        x2, pe2, p=P, training=False, seq_block=16, single_block_max_bytes=0))
    assert jnp.allclose(out2, ref2, atol=1e-6), "tiled eval mismatch vs reference"

    kdrop2 = jax.random.PRNGKey(7)
    out2_tr = jax.block_until_ready(positional_encoding_forward(
        x2, pe2, p=P, training=True, rng_key=kdrop2,
        seq_block=16, single_block_max_bytes=0))
    u2 = jax.random.uniform(kdrop2, (B2, S2, D2), dtype=jnp.float32)
    ref2_tr = jnp.where(u2 >= P, ref2 / (1.0 - P), 0.0)
    assert jnp.allclose(out2_tr, ref2_tr, atol=1e-5), "tiled dropout mismatch vs reference"

    print("KERNEL_OK")
</pallas_src>

<mosaic_0001>
module attributes {stable_mosaic.version = 11 : i64} {
  func.func @_pe_add_kernel(%arg0: memref<2x8x32xf32, #tpu.memory_space<vmem>>, %arg1: memref<8x32xf32, #tpu.memory_space<vmem>>, %arg2: memref<2x8x32xf32, #tpu.memory_space<vmem>>) attributes {dimension_semantics = [], scalar_prefetch = 0 : i64, scratch_operands = 0 : i64, tpu.core_type = #tpu.core_type<tc>} {
    %c0 = arith.constant 0 : index
    %c0_0 = arith.constant 0 : index
    %c0_1 = arith.constant 0 : index
    %0 = vector.load %arg0[%c0, %c0_0, %c0_1] : memref<2x8x32xf32, #tpu.memory_space<vmem>>, vector<2x8x32xf32>
    %c0_2 = arith.constant 0 : index
    %c0_3 = arith.constant 0 : index
    %1 = vector.load %arg1[%c0_2, %c0_3] : memref<8x32xf32, #tpu.memory_space<vmem>>, vector<8x32xf32>
    %2 = vector.shape_cast %1 : vector<8x32xf32> to vector<1x8x32xf32>
    %3 = vector.broadcast %2 : vector<1x8x32xf32> to vector<2x8x32xf32>
    %4 = arith.addf %0, %3 : vector<2x8x32xf32>
    %c0_4 = arith.constant 0 : index
    %c0_5 = arith.constant 0 : index
    %c0_6 = arith.constant 0 : index
    %5 = vector.load %arg2[%c0_4, %c0_5, %c0_6] : memref<2x8x32xf32, #tpu.memory_space<vmem>>, vector<2x8x32xf32>
    tpu.vector_store %arg2[%c0_4, %c0_5, %c0_6], %4 {strides = array<i32>} : memref<2x8x32xf32, #tpu.memory_space<vmem>>, vector<2x8x32xf32>,
    return
  }
}

</mosaic_0001>

<bundles_post_ra>
// kernel: tpu_custom_call.1
= control target key start
LH: loop header
LB: loop body
LE: loop exit
PB: predicated region body
PF: predicated region fallthrough
CT: control target
= control target key end

     0   :  { %7 = vsyncpa [#allocation3], 0  ;;  %s182_s0 = inlined_call_operand.hbm [shape: f32[2,8,32], index: 0, kind: input, shape index: {}]   ;;  %s183_s1 = inlined_call_operand.hbm [shape: f32[8,32], index: 1, kind: input, shape index: {}]   ;;  %s184_s2 = inlined_call_operand.hbm [shape: f32[2,8,32], index: 2, kind: output, shape index: {}]  }
   0x1   :  { %8 = vsyncpa [#allocation6], 0 }
   0x2   :  { %9 = vsyncpa [#allocation4], 0  ;;  %s14_s11 = sshll.u32 %s182_s0, 4  ;;  %s153_s12 = smov [#allocation2]   ;;  %s15_s11 = int_to_ptr.hbm [resolvable:$true] %s14_s11 }
   0x3   :  { %s16_s13 = sshll.u32 %s153_s12, 4  ;;  %s28_s16 = sshll.u32 %s183_s1, 4  ;;  %s17_s13 = int_to_ptr.vmem [resolvable:$true] %s16_s13  ;;  %s29_s16 = int_to_ptr.hbm [resolvable:$true] %s28_s16 }
   0x4   :  { %s154_s17 = smov 128   ;;  %s155_s18 = smov 8  }
   0x5   :  { %22 = dma.hbm_to_vmem [thread:$0]  %s15_s11, 256, %s17_s13, [#allocation3], %s154_s17, %s154_s17, %s155_s18  }
   0x6   :  { %s156_s19 = smov [#allocation5]  }
   0x7   :  { %s30_s20 = sshll.u32 %s156_s19, 4  ;;  %s31_s20 = int_to_ptr.vmem [resolvable:$true] %s30_s20 }
   0x8   :  { %33 = dma.hbm_to_vmem [thread:$0]  %s29_s16, 128, %s31_s20, [#allocation6]  }
   0x9   :  { %147 = dma.done.wait [#allocation3], 256  }
   0xa   :  { %148 = vsyncadd [#allocation3], 4294967040 }
   0xb   :  { %149 = dma.done.wait [#allocation6], 128  }
   0xc   :  { %150 = vsyncadd [#allocation6], 4294967168  ;;  %s157_s0 = smov [#allocation7]   ;;  %s56_s24 = sshll.u32 %s184_s2, 4  ;;  %v42_v0 = vld [vmem:[#allocation2] sm:$0xff]  ;;  %v44_v1 = vld [vmem:[#allocation5] sm:$0xff]  ;;  %s57_s24 = int_to_ptr.hbm [resolvable:$true] %s56_s24 }
   0xd   :  { %s54_s21 = sshll.u32 %s157_s0, 4  ;;  %vm47_vm0 = vcmask 261120   ;;  %v43_v2 = vld [vmem:[#allocation2 + $0x8] sm:$0xff]  ;;  %v45_v3 = vadd.f32 %v44_v1, %v42_v0  ;;  %s55_s21 = int_to_ptr.vmem [resolvable:$true] %s54_s21 }
   0xe   :  { %v46_v4 = vadd.f32 %v44_v1, %v43_v2 }
   0xf   :  { %48 = vst.msk [vmem:[#allocation7] sm:$0xff] %vm47_vm0, %v45_v3 }
  0x10   :  { %49 = vst.msk [vmem:[#allocation7 + $0x8] sm:$0xff] %vm47_vm0, %v46_v4 }
  0x11   :  { %62 = dma.vmem_to_hbm [thread:$0]  %s55_s21, 256, %s57_s24, [#allocation4], %s154_s17, %s154_s17, %s155_s18  }
  0x12   :  { %151 = dma.done.wait [#allocation4], 256  }
  0x13   :  { %152 = vsyncadd [#allocation4], 4294967040 }
  0x14   :  { %67 = vsyncpa [#allocation3], 1 }
  0x15   :  { %68 = vsyncpa [#allocation6], 1 }
  0x16   :  { %69 = vsyncpa [#allocation4], 1 }

</bundles_post_ra>
